<compile_context>
chip_gen: v7x
topology: tpu7x:2x2x1
jax: 0.10.0
libtpu: 0.0.40
codegen_flags: <defaults>
</compile_context>

<pallas_src>
import numpy as np
import jax
import jax.numpy as jnp
from jax.experimental import pallas as pl
from jax.experimental.pallas import tpu as pltpu

SIZES = (1, 2, 3, 6)
NBINS = sum(s * s for s in SIZES)   # 50
KP = 64                             # pyramid axis zero-padded to 64 lanes


# ---------------------------------------------------------------------------
# Host-side glue: PyTorch-semantics adaptive-avg-pool / bilinear matrices.
# ---------------------------------------------------------------------------
def _adaptive_pool_matrix(in_size, out_size):
    A = np.zeros((out_size, in_size), dtype=np.float32)
    for i in range(out_size):
        start = (i * in_size) // out_size
        end = -((-(i + 1) * in_size) // out_size)   # ceil((i+1)*in/out)
        A[i, start:end] = 1.0 / (end - start)
    return A


def _bilinear_matrix(out_size, in_size):
    # F.interpolate bilinear, align_corners=False: src = (dst+0.5)*(in/out) - 0.5, clamp>=0
    L = np.zeros((out_size, in_size), dtype=np.float32)
    scale = in_size / out_size
    for y in range(out_size):
        src = (y + 0.5) * scale - 0.5
        if src < 0.0:
            src = 0.0
        y0 = min(int(np.floor(src)), in_size - 1)
        y1 = min(y0 + 1, in_size - 1)
        w1 = src - y0
        L[y, y0] += 1.0 - w1
        L[y, y1] += w1
    return L


def _largest_tile(total, cap):
    # Largest multiple of 128 that divides `total` (itself a multiple of 128) and <= cap.
    best, t = 128, 128
    while t <= min(cap, total):
        if total % t == 0:
            best = t
        t += 128
    return best


def _pick_vmem_limit():
    # Per-generation scoped-VMEM budget with headroom below physical VMEM
    # (v5e/v6e: 128 MiB physical, v7x: 64 MiB). Conservative fallback works everywhere.
    try:
        cap = pltpu.get_tpu_info().vmem_capacity_bytes
        return min(int(cap * 3 // 4), 96 * 1024 * 1024)
    except Exception:
        return 48 * 1024 * 1024


# ---------------------------------------------------------------------------
# Pass 1: per-batch pyramid projection, spatially tiled + accumulated.
#   grid = (N, HW_pad // thw1), spatial axis is the reduction ("arbitrary").
#   out: projT (N, Cin, KP) f32 = sum_s wbs_s^T @ relu(ws_s^T @ pooled_s^T + bs_s^T)
# ---------------------------------------------------------------------------
def ppm_proj_kernel(x_ref, pT_ref, wsT_ref, bsT_ref, mask_ref, wbsT_ref,
                    o_ref, pooled_acc):
    t = pl.program_id(1)

    @pl.when(t == 0)
    def _():
        pooled_acc[...] = jnp.zeros_like(pooled_acc)

    # Partial adaptive-avg-pool for this spatial tile (all 4 scales in one matmul):
    #   (Cin, thw1) bf16 @ (thw1, KP) bf16 -> f32, accumulated across tiles.
    pooled_acc[...] += jnp.dot(x_ref[0], pT_ref[...],
                               preferred_element_type=jnp.float32)

    @pl.when(t == pl.num_programs(1) - 1)
    def _():
        pooled_bf = pooled_acc[...].astype(jnp.bfloat16)                 # (Cin, KP)
        # Stacked 1x1 stage convs + in-place ReLU: (4C, Cin) @ (Cin, KP).
        stage = jnp.maximum(
            jnp.dot(wsT_ref[...], pooled_bf, preferred_element_type=jnp.float32)
            + bsT_ref[...], 0.0)                                         # (4C, KP) f32
        # Keep, per scale's C rows, only that scale's pyramid columns (precomputed mask).
        stage = (stage * mask_ref[...]).astype(jnp.bfloat16)
        # Fold the bottleneck weight slices BEFORE upsampling (linear ops commute):
        #   (Cin, 4C) @ (4C, KP) -> (Cin, KP).  Padded columns stay exactly zero.
        o_ref[0] = jnp.dot(wbsT_ref[...], stage,
                           preferred_element_type=jnp.float32)


# ---------------------------------------------------------------------------
# Pass 2: fused upsample + bottleneck + ReLU on (batch, spatial) tiles.
#   out_tile = relu( wbx^T @ x_tile + projT @ I_all^T_tile + bb^T )
# ---------------------------------------------------------------------------
def ppm_fuse_kernel(x_ref, projT_ref, iT_ref, wbxT_ref, bbT_ref, o_ref):
    # feats' direct contribution to the bottleneck (the "+ [feats]" of the concat)
    acc = jnp.dot(wbxT_ref[...], x_ref[0], preferred_element_type=jnp.float32)
    # All four bilinear upsamples (already bottleneck-folded) in ONE MXU pass.
    acc = acc + jnp.dot(projT_ref[0].astype(jnp.bfloat16), iT_ref[...],
                        preferred_element_type=jnp.float32)
    o_ref[0] = jnp.maximum(acc + bbT_ref[...], 0.0).astype(o_ref.dtype)


# ---------------------------------------------------------------------------
# Wrapper
# ---------------------------------------------------------------------------
def pyramid_pooling_module(feats_nchw, params, *, thw=None, thw1=None,
                           out_dtype=jnp.float32):
    N, Cin, H, W = feats_nchw.shape
    HW = H * W
    HW_pad = ((HW + 127) // 128) * 128          # lane-aligned spatial extent
    n_sizes = len(SIZES)
    C = params["ws"].shape[-1]
    SC = n_sizes * C

    # x cast to bf16 ONCE; flattened spatial; zero-padded to HW_pad (no-op math).
    x = feats_nchw.reshape(N, Cin, HW).astype(jnp.bfloat16)
    if HW_pad != HW:
        x = jnp.pad(x, ((0, 0), (0, 0), (0, HW_pad - HW)))

    # Spatial tiles: pass 1 (pure bandwidth) up to 1024 lanes, pass 2 up to 512.
    if thw1 is None or HW_pad % thw1 != 0:
        thw1 = _largest_tile(HW_pad, 1024 if thw1 is None else thw1)
    if thw is None or HW_pad % thw != 0:
        thw = _largest_tile(HW_pad, 512 if thw is None else thw)

    # Stacked, transposed pooling / interpolation matrices, zero-padded to (HW_pad, KP).
    pT_np = np.zeros((HW_pad, KP), np.float32)   # P_all^T
    iT_np = np.zeros((KP, HW_pad), np.float32)   # I_all^T
    col = 0
    for s in SIZES:
        P = np.kron(_adaptive_pool_matrix(H, s), _adaptive_pool_matrix(W, s))  # (s*s, HW)
        I = np.kron(_bilinear_matrix(H, s), _bilinear_matrix(W, s))            # (HW, s*s)
        pT_np[:HW, col:col + s * s] = P.T
        iT_np[col:col + s * s, :HW] = I.T
        col += s * s
    pT = jnp.asarray(pT_np, dtype=jnp.bfloat16)
    iT = jnp.asarray(iT_np, dtype=jnp.bfloat16)

    # Column mask: each scale's C stage rows keep only that scale's pyramid columns.
    mask_np = np.zeros((SC, KP), np.float32)
    col = 0
    for idx, s in enumerate(SIZES):
        mask_np[idx * C:(idx + 1) * C, col:col + s * s] = 1.0
        col += s * s
    mask = jnp.asarray(mask_np)

    # Stacked, transposed (channels-first) weights: bf16 for the MXU, biases f32.
    wsT = jnp.transpose(params["ws"], (0, 2, 1)).reshape(SC, Cin).astype(jnp.bfloat16)
    bsT = jnp.transpose(params["bs"], (0, 2, 1)).reshape(SC, 1).astype(jnp.float32)
    wb = params["wb"]                                                    # (4C+Cin, Cin)
    wbsT = jnp.transpose(wb[:SC]).astype(jnp.bfloat16)                   # (Cin, 4C)
    wbxT = jnp.transpose(wb[SC:]).astype(jnp.bfloat16)                   # (Cin, Cin)
    bbT = jnp.transpose(params["bb"]).astype(jnp.float32)                # (Cin, 1)

    vmem_limit = _pick_vmem_limit()

    # ---- pass 1: spatially tiled pyramid projection (output tiny: (N, Cin, KP)) ----
    projT = pl.pallas_call(
        ppm_proj_kernel,
        out_shape=jax.ShapeDtypeStruct((N, Cin, KP), jnp.float32),
        grid=(N, HW_pad // thw1),
        in_specs=[
            pl.BlockSpec((1, Cin, thw1), lambda n, t: (n, 0, t)),
            pl.BlockSpec((thw1, KP), lambda n, t: (t, 0)),
            pl.BlockSpec((SC, Cin), lambda n, t: (0, 0),
                         pipeline_mode=pl.Buffered(1)),
            pl.BlockSpec((SC, 1), lambda n, t: (0, 0),
                         pipeline_mode=pl.Buffered(1)),
            pl.BlockSpec((SC, KP), lambda n, t: (0, 0),
                         pipeline_mode=pl.Buffered(1)),
            pl.BlockSpec((Cin, SC), lambda n, t: (0, 0),
                         pipeline_mode=pl.Buffered(1)),
        ],
        out_specs=pl.BlockSpec((1, Cin, KP), lambda n, t: (n, 0, 0)),
        scratch_shapes=[pltpu.VMEM((Cin, KP), jnp.float32)],
        compiler_params=pltpu.CompilerParams(
            dimension_semantics=("parallel", "arbitrary"),
            vmem_limit_bytes=vmem_limit),
    )(x, pT, wsT, bsT, mask, wbsT)

    # ---- pass 2: fused upsample + bottleneck + ReLU, tiled over (batch, spatial) ----
    out = pl.pallas_call(
        ppm_fuse_kernel,
        out_shape=jax.ShapeDtypeStruct((N, Cin, HW_pad), out_dtype),
        grid=(N, HW_pad // thw),
        in_specs=[
            pl.BlockSpec((1, Cin, thw), lambda n, t: (n, 0, t)),
            pl.BlockSpec((1, Cin, KP), lambda n, t: (n, 0, 0)),
            pl.BlockSpec((KP, thw), lambda n, t: (0, t)),
            pl.BlockSpec((Cin, Cin), lambda n, t: (0, 0),
                         pipeline_mode=pl.Buffered(1)),
            pl.BlockSpec((Cin, 1), lambda n, t: (0, 0),
                         pipeline_mode=pl.Buffered(1)),
        ],
        out_specs=pl.BlockSpec((1, Cin, thw), lambda n, t: (n, 0, t)),
        compiler_params=pltpu.CompilerParams(
            dimension_semantics=("parallel", "parallel"),
            vmem_limit_bytes=vmem_limit),
    )(x, projT, iT, wbxT, bbT)

    if HW_pad != HW:
        out = out[:, :, :HW]
    return out.reshape(N, Cin, H, W)


# ---------------------------------------------------------------------------
# Pure-JAX reference (channels-last concat form, mirrors the PyTorch forward)
# ---------------------------------------------------------------------------
def reference(feats_nchw, params):
    N, Cin, H, W = feats_nchw.shape
    HW = H * W
    x = jnp.transpose(feats_nchw, (0, 2, 3, 1)).reshape(N, HW, Cin).astype(jnp.float32)
    priors = []
    for idx, s in enumerate(SIZES):
        P = jnp.asarray(np.kron(_adaptive_pool_matrix(H, s), _adaptive_pool_matrix(W, s)))
        I = jnp.asarray(np.kron(_bilinear_matrix(H, s), _bilinear_matrix(W, s)))
        pooled = jnp.einsum("ph,nhc->npc", P, x)
        stage = jax.nn.relu(pooled @ params["ws"][idx] + params["bs"][idx])
        priors.append(jnp.einsum("hp,npc->nhc", I, stage))
    priors.append(x)
    cat = jnp.concatenate(priors, axis=-1)
    out = jax.nn.relu(cat @ params["wb"] + params["bb"])
    return jnp.transpose(out.reshape(N, H, W, Cin), (0, 3, 1, 2))


if __name__ == "__main__":
    def run_case(N, Cin, H, W, C, **kw):
        key = jax.random.PRNGKey(0)
        k = jax.random.split(key, 5)
        feats = jax.random.normal(k[0], (N, Cin, H, W), jnp.float32)
        params = {
            "ws": 0.1 * jax.random.normal(k[1], (len(SIZES), Cin, C), jnp.float32),
            "bs": 0.1 * jax.random.normal(k[2], (len(SIZES), 1, C), jnp.float32),
            "wb": 0.1 * jax.random.normal(k[3], (len(SIZES) * C + Cin, Cin), jnp.float32),
            "bb": 0.1 * jax.random.normal(k[4], (1, Cin), jnp.float32),
        }
        out = pyramid_pooling_module(feats, params, **kw)
        jax.block_until_ready(out)
        ref = reference(feats, params)
        assert out.shape == (N, Cin, H, W)
        # bf16 MXU operands with f32 accumulation -> loosened tolerance vs f32 reference.
        np.testing.assert_allclose(np.asarray(out), np.asarray(ref),
                                   rtol=2e-2, atol=2e-2)

    # 1) lane-aligned map (HW=256); tiles forced to 128 so the multi-tile spatial
    #    accumulation in pass 1 and spatial tiling in pass 2 are exercised.
    run_case(2, 8, 16, 16, 16, thw=128, thw1=128)
    # 2) non-multiple-of-128 map (HW = 16*18 = 288 -> padded to 384) exercising the
    #    zero-padding + slice-back path with auto-picked tiles.
    run_case(1, 8, 16, 18, 16)

    print("KERNEL_OK")
</pallas_src>

<mosaic_0001>
module attributes {stable_mosaic.version = 11 : i64} {
  func.func @ppm_proj_kernel(%arg0: i32, %arg1: i32, %arg2: memref<1x8x128xbf16, #tpu.memory_space<vmem>>, %arg3: memref<128x64xbf16, #tpu.memory_space<vmem>>, %arg4: memref<64x8xbf16, #tpu.memory_space<vmem>>, %arg5: memref<64x1xf32, #tpu.memory_space<vmem>>, %arg6: memref<64x64xf32, #tpu.memory_space<vmem>>, %arg7: memref<8x64xbf16, #tpu.memory_space<vmem>>, %arg8: memref<1x8x64xf32, #tpu.memory_space<vmem>>, %arg9: memref<8x64xf32, #tpu.memory_space<vmem>>) attributes {dimension_semantics = [#tpu.dimension_semantics<parallel>, #tpu.dimension_semantics<arbitrary>], iteration_bounds = array<i64: 2, 2>, scalar_prefetch = 0 : i64, scratch_operands = 1 : i64, tpu.core_type = #tpu.core_type<tc>, window_params = [{transform_indices = @transform_0, window_bounds = array<i64: 1, 8, 128>}, {transform_indices = @transform_1, window_bounds = array<i64: 128, 64>}, {pipeline_mode = #tpu.pipeline_mode<synchronous>, transform_indices = @transform_2, window_bounds = array<i64: 64, 8>}, {pipeline_mode = #tpu.pipeline_mode<synchronous>, transform_indices = @transform_3, window_bounds = array<i64: 64, 1>}, {pipeline_mode = #tpu.pipeline_mode<synchronous>, transform_indices = @transform_4, window_bounds = array<i64: 64, 64>}, {pipeline_mode = #tpu.pipeline_mode<synchronous>, transform_indices = @transform_5, window_bounds = array<i64: 8, 64>}, {transform_indices = @transform_6, window_bounds = array<i64: 1, 8, 64>}]} {
    %c0_i32 = arith.constant 0 : i32
    %0 = arith.cmpi eq, %arg1, %c0_i32 : i32
    %1 = arith.extui %0 : i1 to i32
    %c0_i32_0 = arith.constant 0 : i32
    %2 = arith.cmpi ne, %1, %c0_i32_0 : i32
    scf.if %2 {
      %cst_10 = arith.constant 0.000000e+00 : f32
      %13 = vector.broadcast %cst_10 : f32 to vector<8x64xf32>
      %c0_11 = arith.constant 0 : index
      %c0_12 = arith.constant 0 : index
      %14 = vector.load %arg9[%c0_11, %c0_12] : memref<8x64xf32, #tpu.memory_space<vmem>>, vector<8x64xf32>
      tpu.vector_store %arg9[%c0_11, %c0_12], %13 {strides = array<i32>} : memref<8x64xf32, #tpu.memory_space<vmem>>, vector<8x64xf32>,
    } else {
    }
    %c0 = arith.constant 0 : index
    %c0_1 = arith.constant 0 : index
    %3 = vector.load %arg9[%c0, %c0_1] : memref<8x64xf32, #tpu.memory_space<vmem>>, vector<8x64xf32>
    %c0_2 = arith.constant 0 : index
    %c0_3 = arith.constant 0 : index
    %c0_4 = arith.constant 0 : index
    %4 = vector.load %arg2[%c0_2, %c0_3, %c0_4] : memref<1x8x128xbf16, #tpu.memory_space<vmem>>, vector<1x8x128xbf16>
    %5 = vector.shape_cast %4 : vector<1x8x128xbf16> to vector<8x128xbf16>
    %c0_5 = arith.constant 0 : index
    %c0_6 = arith.constant 0 : index
    %6 = vector.load %arg3[%c0_5, %c0_6] : memref<128x64xbf16, #tpu.memory_space<vmem>>, vector<128x64xbf16>
    %cst = arith.constant dense<0.000000e+00> : vector<8x64xf32>
    %7 = tpu.matmul %5, %6, %cst {dimension_numbers = #tpu.dot_dimension_numbers<[1], [0], [0], [1], [0, 0, 1, 1], [], []>} : vector<8x128xbf16>, vector<128x64xbf16>, vector<8x64xf32> -> vector<8x64xf32>
    %8 = arith.addf %3, %7 : vector<8x64xf32>
    %c0_7 = arith.constant 0 : index
    %c0_8 = arith.constant 0 : index
    %9 = vector.load %arg9[%c0_7, %c0_8] : memref<8x64xf32, #tpu.memory_space<vmem>>, vector<8x64xf32>
    tpu.vector_store %arg9[%c0_7, %c0_8], %8 {strides = array<i32>} : memref<8x64xf32, #tpu.memory_space<vmem>>, vector<8x64xf32>,
    %c1_i32 = arith.constant 1 : i32
    %10 = arith.cmpi eq, %arg1, %c1_i32 : i32
    %11 = arith.extui %10 : i1 to i32
    %c0_i32_9 = arith.constant 0 : i32
    %12 = arith.cmpi ne, %11, %c0_i32_9 : i32
    scf.if %12 {
      %c0_10 = arith.constant 0 : index
      %c0_11 = arith.constant 0 : index
      %13 = vector.load %arg9[%c0_10, %c0_11] : memref<8x64xf32, #tpu.memory_space<vmem>>, vector<8x64xf32>
      %14 = arith.truncf %13 : vector<8x64xf32> to vector<8x64xbf16>
      %c0_12 = arith.constant 0 : index
      %c0_13 = arith.constant 0 : index
      %15 = vector.load %arg4[%c0_12, %c0_13] : memref<64x8xbf16, #tpu.memory_space<vmem>>, vector<64x8xbf16>
      %cst_14 = arith.constant dense<0.000000e+00> : vector<64x64xf32>
      %16 = tpu.matmul %15, %14, %cst_14 {dimension_numbers = #tpu.dot_dimension_numbers<[1], [0], [0], [1], [0, 0, 1, 1], [], []>} : vector<64x8xbf16>, vector<8x64xbf16>, vector<64x64xf32> -> vector<64x64xf32>
      %c0_15 = arith.constant 0 : index
      %c0_16 = arith.constant 0 : index
      %17 = vector.load %arg5[%c0_15, %c0_16] : memref<64x1xf32, #tpu.memory_space<vmem>>, vector<64x1xf32>
      %18 = vector.broadcast %17 : vector<64x1xf32> to vector<64x64xf32>
      %19 = arith.addf %16, %18 : vector<64x64xf32>
      %cst_17 = arith.constant 0.000000e+00 : f32
      %20 = vector.broadcast %cst_17 : f32 to vector<64x64xf32>
      %21 = arith.maximumf %19, %20 : vector<64x64xf32>
      %c0_18 = arith.constant 0 : index
      %c0_19 = arith.constant 0 : index
      %22 = vector.load %arg6[%c0_18, %c0_19] : memref<64x64xf32, #tpu.memory_space<vmem>>, vector<64x64xf32>
      %23 = arith.mulf %21, %22 : vector<64x64xf32>
      %24 = arith.truncf %23 : vector<64x64xf32> to vector<64x64xbf16>
      %c0_20 = arith.constant 0 : index
      %c0_21 = arith.constant 0 : index
      %25 = vector.load %arg7[%c0_20, %c0_21] : memref<8x64xbf16, #tpu.memory_space<vmem>>, vector<8x64xbf16>
      %cst_22 = arith.constant dense<0.000000e+00> : vector<8x64xf32>
      %26 = tpu.matmul %25, %24, %cst_22 {dimension_numbers = #tpu.dot_dimension_numbers<[1], [0], [0], [1], [0, 0, 1, 1], [], []>} : vector<8x64xbf16>, vector<64x64xbf16>, vector<8x64xf32> -> vector<8x64xf32>
      %c0_23 = arith.constant 0 : index
      %c0_24 = arith.constant 0 : index
      %c0_25 = arith.constant 0 : index
      %27 = vector.load %arg8[%c0_23, %c0_24, %c0_25] : memref<1x8x64xf32, #tpu.memory_space<vmem>>, vector<1x8x64xf32>
      %28 = vector.shape_cast %27 : vector<1x8x64xf32> to vector<8x64xf32>
      %29 = vector.shape_cast %26 : vector<8x64xf32> to vector<1x8x64xf32>
      tpu.vector_store %arg8[%c0_23, %c0_24, %c0_25], %29 {strides = array<i32>} : memref<1x8x64xf32, #tpu.memory_space<vmem>>, vector<1x8x64xf32>,
    } else {
    }
    return
  }
  func.func @transform_0(%arg0: i32, %arg1: i32) -> (i32, i32, i32) {
    %c0_i32 = arith.constant 0 : i32
    %c0_i32_0 = arith.constant 0 : i32
    return %arg0, %c0_i32, %arg1 : i32, i32, i32
  }
  func.func @transform_1(%arg0: i32, %arg1: i32) -> (i32, i32) {
    %c0_i32 = arith.constant 0 : i32
    %c0_i32_0 = arith.constant 0 : i32
    return %arg1, %c0_i32 : i32, i32
  }
  func.func @transform_2(%arg0: i32, %arg1: i32) -> (i32, i32) {
    %c0_i32 = arith.constant 0 : i32
    %c0_i32_0 = arith.constant 0 : i32
    %c0_i32_1 = arith.constant 0 : i32
    return %c0_i32, %c0_i32_0 : i32, i32
  }
  func.func @transform_3(%arg0: i32, %arg1: i32) -> (i32, i32) {
    %c0_i32 = arith.constant 0 : i32
    %c0_i32_0 = arith.constant 0 : i32
    %c0_i32_1 = arith.constant 0 : i32
    return %c0_i32, %c0_i32_0 : i32, i32
  }
  func.func @transform_4(%arg0: i32, %arg1: i32) -> (i32, i32) {
    %c0_i32 = arith.constant 0 : i32
    %c0_i32_0 = arith.constant 0 : i32
    %c0_i32_1 = arith.constant 0 : i32
    return %c0_i32, %c0_i32_0 : i32, i32
  }
  func.func @transform_5(%arg0: i32, %arg1: i32) -> (i32, i32) {
    %c0_i32 = arith.constant 0 : i32
    %c0_i32_0 = arith.constant 0 : i32
    %c0_i32_1 = arith.constant 0 : i32
    return %c0_i32, %c0_i32_0 : i32, i32
  }
  func.func @transform_6(%arg0: i32, %arg1: i32) -> (i32, i32, i32) {
    %c0_i32 = arith.constant 0 : i32
    %c0_i32_0 = arith.constant 0 : i32
    %c0_i32_1 = arith.constant 0 : i32
    return %arg0, %c0_i32, %c0_i32_0 : i32, i32, i32
  }
}

</mosaic_0001>

<bundles_post_ra>
// kernel: tpu_custom_call.1
= control target key start
LH: loop header
LB: loop body
LE: loop exit
PB: predicated region body
PF: predicated region fallthrough
CT: control target
= control target key end

     0   :  { %11 = vsyncpa [#allocation4], 0  ;;  %s1302_s0 = inlined_call_operand.vmem [shape: bf16[2,8,256], index: 0, kind: input, shape index: {}]   ;;  %s1303_s1 = inlined_call_operand.vmem [shape: bf16[256,64], index: 1, kind: input, shape index: {}]   ;;  %s1304_s2 = inlined_call_operand.vmem [shape: bf16[64,8], index: 2, kind: input, shape index: {}]   ;;  %s1305_s3 = inlined_call_operand.vmem [shape: f32[64,1], index: 3, kind: input, shape index: {}]   ;;  %s1306_s4 = inlined_call_operand.vmem [shape: f32[64,64], index: 4, kind: input, shape index: {}]   ;;  %s1307_s5 = inlined_call_operand.vmem [shape: bf16[8,64], index: 5, kind: input, shape index: {}]   ;;  %s1308_s6 = inlined_call_operand.hbm [shape: f32[2,8,64], index: 6, kind: output, shape index: {}]  }
   0x1   :  { %13 = vsyncpa [#allocation4 + $0x1], 0  ;;  %s1074_s21 = smov 0   ;;  %s1076_s22 = smov 0  }
   0x2   :  { %s1078_s23 = smov 0   ;;  %s1080_s24 = smov 0  }
   0x3   :  { %s1082_s25 = smov 0   ;;  %s1084_s26 = smov 0  }
   0x4   :  { %s1086_s27 = smov 0   ;;  %s1088_s28 = smov 0  }
   0x5 LB: > { %1313 = sst [smem:[#allocation6_spill]] %s1022_s26  ;;  %s750_s29 = sadd.s32 4294967295, %s1030_s28   ;;  %s1030_s28 = sphi %s1088_s28, %s19_s28   ;;  %s1026_s27 = sphi %s1086_s27, %s1323_s27   ;;  %s1022_s26 = sphi %s1084_s26, %s1322_s26   ;;  %s1018_s25 = sphi %s1082_s25, %s1321_s25   ;;  %s1014_s24 = sphi %s1080_s24, %s1320_s24   ;;  %s1010_s23 = sphi %s1078_s23, %s1326_s23   ;;  %s1006_s22 = sphi %s1076_s22, %s1325_s22   ;;  %s1002_s21 = sphi %s1074_s21, %s1324_s21  }
   0x6   : > { %1314 = sst [smem:[#allocation7_spill]] %s1026_s27  ;;  %s751_s30 = sadd.s32 4294967294, %s1030_s28  }
   0x7   : > { %s28_s7 = sadd.s32 1, %s1022_s26  ;;  %s31_s8 = sadd.s32 1, %s1026_s27 }
   0x8   : > { %p29_p0 = scmp.ge.s32.totalorder %s28_s7, 2  ;;  %p186_p1 = scmp.ne.s32.totalorder %s1010_s23, %s1006_s22 }
   0x9   : > { %p187_p2 = scmp.eq.s32.totalorder %s750_s29, 3  ;;  %p192_p4 = scmp.ne.s32.totalorder %s1006_s22, %s1002_s21 }
   0xa   : > { %s1328_s7 = smov (%p29_p0, %s28_s7), 0  ;;  %s1330_s8 = smov (!%p29_p0, %s31_s8), %s1026_s27 }
   0xb   : > { %1315 = sst [smem:[#allocation8_spill]] %s1328_s7  ;;  %p1123_p3 = por %p187_p2, %p186_p1 }
   0xc   : > { %p33_p5 = scmp.ge.s32.totalorder %s1330_s8, 2  ;;  %p193_p6 = scmp.eq.s32.totalorder %s751_s30, 3 }
   0xd   : > { %p754_p7 = scmp.ge.s32.totalorder %s1030_s28, 1  ;;  %p243_p8 = scmp.lt.s32.totalorder %s1030_s28, 5 }
   0xe   : > { %s1332_s8 = smov (%p33_p5, %s1330_s8), 0  ;;  %p1133_p9 = por %p193_p6, %p192_p4 }
   0xf   : > { %1317 = sst [smem:[#allocation9_spill]] %s1332_s8  ;;  %p244_p10 = pnand %p754_p7, %p243_p8 }
  0x10   : > { %s173_s11 = ssub.s32 %s1026_s27, %s1332_s8  ;;  %s176_s12 = sadd.s32 1, %s1010_s23 }
  0x11   : > { %p174_p11 = scmp.eq.s32.totalorder %s173_s11, 0  ;;  %247 = sbr.rel (%p244_p10) target bundleno = 775 (0x307), region = 44 }
  0x12   : > { %s1311_s14 = sand.u32 (!%p244_p10), 1, %s1006_s22   ;;  %p281_p12 = scmp.lt.s32.totalorder (!%p244_p10), %s1018_s25, 1 }
  0x13   : > { %s1141_s13 = scalar_select %p174_p11, %s1010_s23, %s176_s12  }
  0x14   : > { %s1147_s15 = sshll.u32 (!%p244_p10), %s1311_s14, 3  ;;  %p283_p13 = scmp.lt.s32.totalorder (!%p244_p10), %s1014_s24, 1 }
  0x15   : > { %s758_s16 = sshll.u32 (!%p244_p10), %s1014_s24, 4  ;;  %s280_s26 = scalar_lea.vmem (!%p244_p10), [#allocation3], %s1147_s15 }
  0x16   : > { %p290_p0 = scmp.lt.s32.totalorder (!%p244_p10), %s758_s16, 31  ;;  %p760_p1 = scmp.ne.s32.totalorder (!%p244_p10), %s1014_s24, 0 }
  0x18   : > { %s282_s17 = scalar_select %p281_p12, %s1018_s25, 1 }
  0x19   : > { %s284_s18 = scalar_select %p283_p13, %s1014_s24, 1 }
  0x1a   : > { %s756_s19 = sshll.u32 %s282_s17, 1  ;;  %s1334_s16 = smov (!%p290_p0, %s758_s16), 31  ;;  %vm300_vm0 = vcmask (!%p760_p1), 523264   ;;  %v1032_v0 = vmov (!%p760_p1), 0.0  }
  0x1b   : > { %s286_s20 = sadd.s32 %s756_s19, %s284_s18  ;;  %s759_s8 = sshll.u32 %s1334_s16, 2  ;;  %301 = vst.msk [vmem:[#allocation2] sm:$0xff] (!%p760_p1), %vm300_vm0, %v1032_v0 }
  0x1c   : > { %s757_s29 = sshll.u32 %s286_s20, 2  ;;  %s1161_s14 = scalar_lea.vmem %s1303_s1, %s759_s8 }
  0x1d   : > { %s1156_s12 = scalar_lea.vmem %s1302_s0, %s757_s29  ;;  %299 = sbr.rel (%p760_p1) target bundleno = 36 (0x24), region = 48 }
  0x24 PF: > { %v922_v1 = vld [vmem:[%s1161_s14] sm:$0xff]   ;;  %v1033_v2 = vmov 0.0   ;;  %v923_v3 = vld [vmem:[%s1161_s14 + $0x8] sm:$0xff]   ;;  %vm1034_vm1 = vmmov 0   ;;  %v924_v4 = vld [vmem:[%s1161_s14 + $0x10] sm:$0xff]   ;;  %vm409_vm2 = vcmask 523264  }
  0x25   : > { %802 = vmatprep.subr.bf16.mxu0 %v1033_v2  ;;  %818 = vmatprep.mubr.msk.bf16.mxu0 %vm1034_vm1, %v1033_v2  ;;  %v925_v5 = vld [vmem:[%s1161_s14 + $0x18] sm:$0xff]   ;;  %v926_v6 = vld [vmem:[%s1161_s14 + $0x20] sm:$0xff]   ;;  %v927_v7 = vld [vmem:[%s1161_s14 + $0x28] sm:$0xff]   ;;  %p769_p2 = scmp.ne.s32.totalorder %s1014_s24, 1 }
  0x26   : > { %803 = vmatpush3.bf16.msra.mxu0 %v922_v1  ;;  %v928_v8 = vld [vmem:[%s1161_s14 + $0x30] sm:$0xff]   ;;  %v929_v9 = vld [vmem:[%s1161_s14 + $0x38] sm:$0xff]   ;;  %v303_v10 = vld [vmem:[%s1156_s12] sm:$0xf]  ;;  %vm506_vm3 = vcmask (!%p769_p2), 1043456   ;;  %vm493_vm4 = vcmask (!%p769_p2), 64512  }
  0x27   : > { %804 = vmatprep.subr.bf16.mxu0 %v1033_v2  ;;  %v302_v11 = vld [vmem:[#allocation2] sm:$0xff]  ;;  %v933_v21 = vld [vmem:[%s1304_s2 + $0x8] sm:$0xff] (!%p769_p2)   ;;  %v934_v22 = vld [vmem:[%s1304_s2 + $0x10] sm:$0xff] (!%p769_p2)   ;;  %v1035_v23 = vmov (!%p769_p2), 0   ;;  %v1036_v33 = vmov (!%p769_p2), 0.0   ;;  %vm1037_vm5 = vmmov (!%p769_p2), 0  }
  0x28   : > { %v932_v19 = vld [vmem:[%s1304_s2] sm:$0xff] (!%p769_p2)   ;;  %930 = vset.pattern.permute.xlu0 (!%p769_p2), %v1035_v23  ;;  %v427_v25 = vld [vmem:[%s1305_s3 + $0x10] sm:$0xff] (!%p769_p2)  ;;  %931 = vset.pattern.permute.xlu1 (!%p769_p2), %v1035_v23  ;;  %v426_v26 = vld [vmem:[%s1305_s3 + $0x8] sm:$0xff] (!%p769_p2) }
  0x29   : > { %v425_v24 = vld [vmem:[%s1305_s3] sm:$0xff] (!%p769_p2)  ;;  %445 = vperm.xlu1 (!%p769_p2), %931, %v427_v25   ;;  %v428_v27 = vld [vmem:[%s1305_s3 + $0x18] sm:$0xff] (!%p769_p2)  ;;  %v430_v30 = vld [vmem:[%s1305_s3 + $0x28] sm:$0xff] (!%p769_p2)  ;;  %832 = vmatprep.subr.bf16.mxu1 (!%p769_p2), %v1036_v33 }
  0x2a   : > { %805 = vmatpush3.bf16.msra.mxu0 %v923_v3  ;;  %435 = vperm.xlu0 (!%p769_p2), %930, %v425_v24   ;;  %v429_v28 = vld [vmem:[%s1305_s3 + $0x20] sm:$0xff] (!%p769_p2)  ;;  %v935_v29 = vld [vmem:[%s1304_s2 + $0x18] sm:$0xff] (!%p769_p2)   ;;  %v431_v31 = vld [vmem:[%s1305_s3 + $0x30] sm:$0xff] (!%p769_p2) }
  0x2b   : > { %806 = vmatprep.subr.bf16.mxu0 %v1033_v2  ;;  %v432_v32 = vld [vmem:[%s1305_s3 + $0x38] sm:$0xff] (!%p769_p2)  ;;  %840 = vmatprep.mubr.msk.bf16.mxu1 (!%p769_p2), %vm1037_vm5, %v1036_v33  ;;  %v585_v48 = vld [vmem:[%s1306_s4 + $0x10] sm:$0xff] (!%p769_p2)  ;;  %v583_v52 = vld [vmem:[%s1306_s4] sm:$0xff] (!%p769_p2) }
  0x2c   : > { %v586_v50 = vld [vmem:[%s1306_s4 + $0x18] sm:$0xff] (!%p769_p2)  ;;  %v584_v54 = vld [vmem:[%s1306_s4 + $0x8] sm:$0xff] (!%p769_p2) }
  0x2d   : > { %450 = vperm.xlu1 (!%p769_p2), %931, %v428_v27  }
  0x2e   : > { %807 = vmatpush3.bf16.msra.mxu0 %v924_v4  ;;  %440 = vperm.xlu0 (!%p769_p2), %930, %v426_v26  }
  0x2f   : > { %808 = vmatprep.subr.bf16.mxu0 %v1033_v2 }
  0x31   : > { %460 = vperm.xlu1 (!%p769_p2), %931, %v430_v30  }
  0x32   : > { %809 = vmatpush3.bf16.msra.mxu0 %v925_v5  ;;  %455 = vperm.xlu0 (!%p769_p2), %930, %v429_v28  }
  0x33   : > { %810 = vmatprep.subr.bf16.mxu0 %v1033_v2 }
  0x35   : > { %470 = vperm.xlu1 (!%p769_p2), %931, %v432_v32  }
  0x36   : > { %811 = vmatpush3.bf16.msra.mxu0 %v926_v6  ;;  %465 = vperm.xlu0 (!%p769_p2), %930, %v431_v31  }
  0x37   : > { %812 = vmatprep.subr.bf16.mxu0 %v1033_v2 }
  0x3a   : > { %813 = vmatpush3.bf16.msra.mxu0 %v927_v7 }
  0x3b   : > { %814 = vmatprep.subr.bf16.mxu0 %v1033_v2 }
  0x3e   : > { %815 = vmatpush3.bf16.msra.mxu0 %v928_v8  ;;  %v589_v8 = vld [vmem:[%s1306_s4 + $0x30] sm:$0xff] (!%p769_p2) }
  0x3f   : > { %816 = vmatprep.subr.bf16.mxu0 %v1033_v2 }
  0x42   : > { %817 = vmatpush3.bf16.msra.mxu0 %v929_v9 }
  0x45   : > { %819 = vmatmul.mubr.bf16.vlgmr.msra.gmra.mrb[0].mxu0 %v303_v10  ;;  %v590_v10 = vld [vmem:[%s1306_s4 + $0x38] sm:$0xff] (!%p769_p2) }
  0x46   : > { %824 = vmatprep.mubr.msk.bf16.mxu0 (!%p769_p2), %vm493_vm4, %v932_v19 }
  0xa8   : > { %v446_v35 = vpop.permute.xlu1 (!%p769_p2), %445 }
  0xa9   : > { %v436_v34 = vpop.permute.xlu0 (!%p769_p2), %435 }
  0xac   : > { %v451_v37 = vpop.permute.xlu1 (!%p769_p2), %450 }
  0xad   : > { %v441_v36 = vpop.permute.xlu0 (!%p769_p2), %440 }
  0xb0   : > { %v461_v47 = vpop.permute.xlu1 (!%p769_p2), %460 }
  0xb1   : > { %v456_v41 = vpop.permute.xlu0 (!%p769_p2), %455 }
  0xb4   : > { %v471_v1 = vpop.permute.xlu1 (!%p769_p2), %470 }
  0xb5   : > { %v466_v58 = vpop.permute.xlu0 (!%p769_p2), %465 }
 0x115   : > { %414 = sbr.rel (%p769_p2) target bundleno = 750 (0x2ee), region = 52 }
 0x118   : > { %v402_v12 = vpop.f32.mrb[0].mxu0 }
 0x119   : > { %v408_v13 = vadd.f32 %v402_v12, %v302_v11  ;;  %v820_v14 = vpop.f32.mrb[1].mxu0  ;;  %v587_v12 = vld [vmem:[%s1306_s4 + $0x20] sm:$0xff] (!%p769_p2) }
 0x11a   : > { %v405_v15 = vpop.f32.mrb[2].mxu0  ;;  %v588_v14 = vld [vmem:[%s1306_s4 + $0x28] sm:$0xff] (!%p769_p2) }
 0x11b   : > { %410 = vst.msk [vmem:[#allocation2] sm:$0xff] %vm409_vm2, %v408_v13  ;;  %v821_v16 = vpop.f32.mrb[3].mxu0 }
 0x122   : > { %v415_v17 = vld [vmem:[#allocation2] sm:$0xff] }
 0x123   : > { %v416_v18 = vpack.c.bf16 %v415_v17, %v415_v17 }
 0x125   : > { %844 = vmatprep.subr.msk.bf16.mxu0 %vm506_vm3, %v416_v18  ;;  %v508_v20 = vsel %vm506_vm3, %v416_v18, 0 }
 0x126   : > { %823 = vmatpush3.bf16.msra.mxu0 %v508_v20 }
 0x129   : > { %825 = vmatmul.mubr.msk.bf16.vlgmr.msra.gmra.mrb[0].mxu0 %vm493_vm4, %v933_v21 }
 0x12a   : > { %828 = vmatprep.mubr.msk.bf16.mxu0 %vm493_vm4, %v934_v22  ;;  %v603_v22 = vld [vmem:[%s1307_s5] sm:$0xf] }
 0x131   : > { %829 = vmatmul.mubr.msk.bf16.gmra.mrb[4].mxu0 %vm493_vm4, %v935_v29 }
 0x1fc   : > { %v826_v38 = vpop.f32.mrb[0].mxu0 }
 0x1fd   : > { %v553_v39 = vadd.f32 %v826_v38, %v446_v35  ;;  %v544_v40 = vpop.f32.mrb[1].mxu0 }
 0x1fe   : > { %v545_v42 = vadd.f32 %v544_v40, %v436_v34  ;;  %v827_v43 = vpop.f32.mrb[2].mxu0 }
 0x1ff   : > { %v577_v44 = vmax.f32 %v553_v39, 0.0  ;;  %v556_v45 = vadd.f32 %v827_v43, %v451_v37  ;;  %v547_v46 = vpop.f32.mrb[3].mxu0 }
 0x200   : > { %v575_v49 = vmax.f32 %v545_v42, 0.0  ;;  %v548_v51 = vadd.f32 %v547_v46, %v441_v36 }
 0x201   : > { %v578_v53 = vmax.f32 %v556_v45, 0.0  ;;  %v593_v56 = vmul.f32 %v585_v48, %v577_v44 }
 0x202   : > { %v576_v55 = vmax.f32 %v548_v51, 0.0  ;;  %v591_v59 = vmul.f32 %v583_v52, %v575_v49 }
 0x203   : > { %v594_v57 = vmul.f32 %v586_v50, %v578_v53 }
 0x204   : > { %v592_v60 = vmul.f32 %v584_v54, %v576_v55  ;;  %v830_v61 = vpop.f32.mrb[4].mxu0 }
 0x205   : > { %v569_v62 = vadd.f32 %v830_v61, %v466_v58  ;;  %v560_v63 = vpop.f32.mrb[5].mxu0  ;;  %v600_v0 = vpack.c.bf16 %v594_v57, %v593_v56 }
 0x206   : > { %v561_v2 = vadd.f32 %v560_v63, %v456_v41  ;;  %v831_v3 = vpop.f32.mrb[6].mxu0  ;;  %v599_v4 = vpack.c.bf16 %v592_v60, %v591_v59 }
 0x207   : > { %v581_v5 = vmax.f32 %v569_v62, 0.0  ;;  %v572_v6 = vadd.f32 %v831_v3, %v471_v1  ;;  %v563_v7 = vpop.f32.mrb[7].mxu0 }
 0x208   : > { %v579_v9 = vmax.f32 %v561_v2, 0.0  ;;  %v564_v11 = vadd.f32 %v563_v7, %v461_v47  ;;  %833 = vmatpush3.bf16.msra.mxu1 %v599_v4 }
 0x209   : > { %v582_v13 = vmax.f32 %v572_v6, 0.0  ;;  %834 = vmatprep.subr.bf16.mxu1 %v1036_v33  ;;  %v597_v16 = vmul.f32 %v589_v8, %v581_v5 }
 0x20a   : > { %v580_v15 = vmax.f32 %v564_v11, 0.0  ;;  %v595_v18 = vmul.f32 %v587_v12, %v579_v9 }
 0x20b   : > { %v598_v17 = vmul.f32 %v590_v10, %v582_v13 }
 0x20c   : > { %v596_v19 = vmul.f32 %v588_v14, %v580_v15  ;;  %835 = vmatpush3.bf16.msra.mxu1 %v600_v0 }
 0x20d   : > { %836 = vmatprep.subr.bf16.mxu1 %v1036_v33  ;;  %v602_v20 = vpack.c.bf16 %v598_v17, %v597_v16 }
 0x20e   : > { %v601_v21 = vpack.c.bf16 %v596_v19, %v595_v18 }
 0x210   : > { %837 = vmatpush3.bf16.msra.mxu1 %v601_v21 }
 0x211   : > { %838 = vmatprep.subr.bf16.mxu1 %v1036_v33 }
 0x214   : > { %839 = vmatpush3.bf16.msra.mxu1 %v602_v20 }
 0x217   : > { %841 = vmatmul.mubr.msk.bf16.vlgmr.msra.gmra.mrb[0].mxu1 %vm409_vm2, %v603_v22 }
 0x2ea   : > { %v641_v23 = vpop.f32.mrb[0].mxu1 }
 0x2eb   : > { %647 = vst.msk [vmem:[%s280_s26] sm:$0xff] %vm409_vm2, %v641_v23  ;;  %v842_v24 = vpop.f32.mrb[1].mxu1 }
 0x2ec   : > { %v644_v25 = vpop.f32.mrb[2].mxu1 }
 0x2ed   : > { %v843_v26 = vpop.f32.mrb[3].mxu1 }
 0x2ee PF: > { %s780_s27 = sshll.u32 %s1018_s25, 7  ;;  %s662_s16 = sshll.u32 %s280_s26, 4  ;;  %s663_s16 = int_to_ptr.vmem [resolvable:$true] %s662_s16 }
 0x2ef   : > { %s1251_s14 = scalar_lea.hbm %s1308_s6, %s780_s27  ;;  %s1319_s24 = sand.u32 1, %s1006_s22  }
 0x2f0   : > { %s649_s17 = scalar_lea.sflag [#allocation4], %s1319_s24  ;;  %s936_s18 = scalar_lea.vmem %s663_s16, 128 }
 0x2f1   : > { %p937_p4 = scmp.ne.s32.totalorder %s663_s16, %s936_s18  ;;  %s1038_s19 = smov [#allocation3]  }
 0x2f2   : > { %s940_s20 = sshll.u32 %s1038_s19, 4  ;;  %s941_s20 = int_to_ptr.vmem [resolvable:$false] %s940_s20 }
 0x2f3   : > { %p938_p5 = pnand %p937_p4, %p1123_p3  ;;  %s942_s29 = scalar_lea.vmem %s941_s20, 256 }
 0x2f4   : > { %p943_p7 = scmp.lt.s32.totalorder %s663_s16, %s941_s20  ;;  %p944_p8 = scmp.lt.s32.totalorder %s942_s29, %s936_s18 }
 0x2f5   : > { %p939_p6 = pneg %p938_p5 }
 0x2f6   : > { %p945_p10 = por %p944_p8, %p943_p7 }
 0x2f8   : > { %p946_p11 = pnand %p945_p10, %p939_p6 }
 0x2fa   : > { %949 = shalt.err (!%p946_p11)
}
 0x2fb   : > { %s950_s25 = scalar_lea.hbm %s1251_s14, 128  ;;  %s954_s30 = scalar_lea.hbm %s1308_s6, 256 }
 0x2fc   : > { %p951_p12 = scmp.ne.s32.totalorder %s1251_s14, %s950_s25  ;;  %p955_p1 = scmp.lt.u32.totalorder %s1251_s14, %s1308_s6 }
 0x2fd   : > { %p956_p2 = scmp.lt.u32.totalorder %s954_s30, %s950_s25  ;;  %p958_p5 = scmp.lt.u32.totalorder %s950_s25, %s1251_s14 }
 0x2fe   : > { %p952_p13 = pnand %p951_p12, %p1123_p3 }
 0x2ff   : > { %p957_p4 = por %p956_p2, %p955_p1 }
 0x300   : > { %p953_p0 = pneg %p952_p13 }
 0x301   : > { %p959_p6 = por %p958_p5, %p957_p4 }
 0x303   : > { %p960_p7 = pnand %p959_p6, %p953_p0 }
 0x305   : > { %963 = shalt.err (!%p960_p7)
}
 0x306   : > { %845 = dma.vmem_to_hbm [thread:$0]  (%p1123_p3), %s663_s16, 128, %s1251_s14, %s649_s17  }
 0x307 PF: > { %p851_p8 = scmp.ge.s32.totalorder %s1030_s28, 2  ;;  %s674_s27 = sand.u32 1, %s1002_s21  }
 0x308   : > { %s675_s7 = scalar_lea.sflag [#allocation4], %s674_s27 }
 0x309   : > { %p848_p10 = pnand %p851_p8, %p1133_p9 }
 0x30b   : > { %997 = dma.done.wait (!%p848_p10), %s675_s7, 128  }
 0x30c   : > { %999 = vsyncadd (!%p848_p10), %s675_s7, 4294967168  ;;  %s19_s28 = sadd.s32 1, %s1030_s28   ;;  %s1320_s24 = sld [smem:[#allocation6_spill]] }
 0x30d   : > { %p16_p11 = scmp.ge.s32.totalorder %s19_s28, 6   ;;  %s1321_s25 = sld [smem:[#allocation7_spill]] }
 0x30e   : > { %s1322_s26 = sld [smem:[#allocation8_spill]]  ;;  %s1323_s27 = sld [smem:[#allocation9_spill]] }
 0x30f   : > { %s1324_s21 = smov %s1006_s22  ;;  %s1325_s22 = smov %s1010_s23 }
 0x310   : > { %s1326_s23 = smov %s1141_s13  ;;  %18 = sbr.rel (!%p16_p11) target bundleno = 5 (0x5), region = 90 }
 0x317   :  { %680 = vsyncpa [#allocation4], 1 }
 0x318   :  { %682 = vsyncpa [#allocation4 + $0x1], 1 }

</bundles_post_ra>
